<compile_context>
chip_gen: v7x
topology: tpu7x:2x2x1
jax: 0.10.0
libtpu: 0.0.40
codegen_flags: <defaults>
</compile_context>

<pallas_src>
import jax
import jax.numpy as jnp
from jax.experimental import pallas as pl
from jax.experimental.pallas import tpu as pltpu

# Hyper-parameters implied by the module (args.width_mult=1.0, args.output_size=10)
WIDTH_MULT = 1.0
OUTPUT_SIZE = 10
IN_DIM = 28 * 28                     # 784
H1 = int(300 * WIDTH_MULT)           # 300
H2 = int(100 * WIDTH_MULT)           # 100


def _round_up(x, m):
    return (x + m - 1) // m * m


# Lane-padded feature dims (multiples of 128)
H1_PAD = _round_up(H1, 128)              # 384
H2_PAD = _round_up(H2, 128)              # 128
OUT_PAD = _round_up(OUTPUT_SIZE, 128)    # 128

TB_MAX = 1024   # max batch tile; full working set at 1024 rows is ~12 MiB of VMEM


def _choose_tiling(B):
    """Pick (tb, b_pad): tile as large as sensible, batch grid always >= 2 steps.

    - B >= 2*TB_MAX: tb = TB_MAX (multiple of 256, MXU friendly), grid >= 2 naturally.
    - otherwise: split the (padded) batch into exactly two tiles rounded to 16 rows,
      so v7x's two TensorCores both get work; the extra padded rows are negligible.
    """
    if B >= 2 * TB_MAX:
        tb = TB_MAX
        b_pad = _round_up(B, tb)
    else:
        tb = min(TB_MAX, max(16, _round_up((B + 1) // 2, 16)))
        b_pad = 2 * tb
    assert tb % 16 == 0 and b_pad % tb == 0 and b_pad // tb >= 2
    return tb, b_pad


def lenet_kernel(x_ref, w1_ref, b1_ref, w2_ref, b2_ref, w3_ref, b3_ref, o_ref):
    """Fused MLP hot path: 3 bf16 MXU matmuls (f32 acc) + f32 bias/ReLU epilogues."""
    x = x_ref[...].astype(jnp.bfloat16)                                  # (TB, 784) f32 -> bf16 in VMEM
    h1 = jnp.dot(x, w1_ref[...], preferred_element_type=jnp.float32)    # (TB, 384) f32
    h1 = jnp.maximum(h1 + b1_ref[...], 0.0)                             # ReLU (f32)
    h2 = jnp.dot(h1.astype(jnp.bfloat16), w2_ref[...],
                 preferred_element_type=jnp.float32)                    # (TB, 128) f32
    h2 = jnp.maximum(h2 + b2_ref[...], 0.0)                             # ReLU (f32)
    out = jnp.dot(h2.astype(jnp.bfloat16), w3_ref[...],
                  preferred_element_type=jnp.float32)                   # (TB, 128) f32
    o_ref[...] = out + b3_ref[...]


@jax.jit
def lenet_forward(x_nchw, params):
    """x_nchw: (B, 1, 28, 28) float32 -> (B, OUTPUT_SIZE) float32.

    params: lane-padded bf16 weights + f32 biases from prepare_params().
    """
    B = x_nchw.shape[0]
    w1, b1, w2, b2, w3, b3 = params
    tb, b_pad = _choose_tiling(B)

    # Glue: flatten exactly like x.view(B, 28*28, 1, 1) (1x1 spatial -> matmul).
    # Stay in f32 here -- the bf16 cast happens inside the kernel, so no extra
    # HBM round-trip for a bf16 copy of x.
    x2d = x_nchw.reshape(B, IN_DIM)
    if b_pad != B:
        x2d = jnp.pad(x2d, ((0, b_pad - B), (0, 0)))

    grid = (b_pad // tb,)

    flops = 2 * b_pad * (IN_DIM * H1_PAD + H1_PAD * H2_PAD + H2_PAD * OUT_PAD)
    bytes_accessed = (
        2 * (w1.size + w2.size + w3.size)          # bf16 weights (read once)
        + 4 * (b1.size + b2.size + b3.size)        # f32 biases
        + 4 * b_pad * IN_DIM                       # f32 activations in
        + 4 * b_pad * OUT_PAD                      # f32 logits out
    )

    def const_spec(shape):
        # Constant block index -> weight/bias DMA'd once, resident in VMEM.
        return pl.BlockSpec(shape, lambda i: (0, 0))

    out = pl.pallas_call(
        lenet_kernel,
        out_shape=jax.ShapeDtypeStruct((b_pad, OUT_PAD), jnp.float32),
        grid=grid,
        in_specs=[
            pl.BlockSpec((tb, IN_DIM), lambda i: (i, 0)),   # x: pipelined over batch
            const_spec((IN_DIM, H1_PAD)),
            const_spec((1, H1_PAD)),
            const_spec((H1_PAD, H2_PAD)),
            const_spec((1, H2_PAD)),
            const_spec((H2_PAD, OUT_PAD)),
            const_spec((1, OUT_PAD)),
        ],
        out_specs=pl.BlockSpec((tb, OUT_PAD), lambda i: (i, 0)),
        compiler_params=pltpu.CompilerParams(
            dimension_semantics=("parallel",),       # >=2 steps -> megacore split on v7x
            vmem_limit_bytes=32 * 1024 * 1024,       # well within v7x 64 MiB
            # Let XLA fold the reshape/pad producer into the x operand.
            allow_input_fusion=[True, False, False, False, False, False, False],
        ),
        cost_estimate=pl.CostEstimate(
            flops=flops, transcendentals=0, bytes_accessed=bytes_accessed),
    )(x2d, w1, b1, w2, b2, w3, b3)

    # Drop the padded batch rows and the padded output lanes.
    # (torch's .squeeze() on (B,10,1,1) -> (B,10); we return (B,10) directly.)
    return out[:B, :OUTPUT_SIZE]


def init_params(key):
    """Deterministic synthetic init (shapes match nn.Conv2d(in, out, 1) weights,
    stored transposed as (in, out) for x @ W).  Unpadded, f32."""
    k1, k2, k3, k4, k5, k6 = jax.random.split(key, 6)

    def uniform_fan_in(k, shape, fan_in):
        bound = 1.0 / jnp.sqrt(fan_in)
        return jax.random.uniform(k, shape, jnp.float32, -bound, bound)

    w1 = uniform_fan_in(k1, (IN_DIM, H1), IN_DIM)
    b1 = uniform_fan_in(k2, (1, H1), IN_DIM)
    w2 = uniform_fan_in(k3, (H1, H2), H1)
    b2 = uniform_fan_in(k4, (1, H2), H1)
    w3 = uniform_fan_in(k5, (H2, OUTPUT_SIZE), H2)
    b3 = uniform_fan_in(k6, (1, OUTPUT_SIZE), H2)
    return (w1, b1, w2, b2, w3, b3)


def prepare_params(raw):
    """Zero-pad feature dims to multiples of 128; weights -> bf16, biases stay f32.
    Padding columns/rows are zero so the padded math is exact for the real outputs."""
    w1, b1, w2, b2, w3, b3 = raw
    w1p = jnp.pad(w1, ((0, 0), (0, H1_PAD - H1))).astype(jnp.bfloat16)
    b1p = jnp.pad(b1, ((0, 0), (0, H1_PAD - H1)))
    w2p = jnp.pad(w2, ((0, H1_PAD - H1), (0, H2_PAD - H2))).astype(jnp.bfloat16)
    b2p = jnp.pad(b2, ((0, 0), (0, H2_PAD - H2)))
    w3p = jnp.pad(w3, ((0, H2_PAD - H2), (0, OUT_PAD - OUTPUT_SIZE))).astype(jnp.bfloat16)
    b3p = jnp.pad(b3, ((0, 0), (0, OUT_PAD - OUTPUT_SIZE)))
    return (w1p, b1p, w2p, b2p, w3p, b3p)


if __name__ == "__main__":
    key = jax.random.PRNGKey(0)
    k_x, k_p = jax.random.split(key)

    B = 2
    x = jax.random.normal(k_x, (B, 1, 28, 28), dtype=jnp.float32)  # NCHW input
    raw_params = init_params(k_p)
    params = prepare_params(raw_params)

    out = lenet_forward(x, params)
    out = jax.block_until_ready(out)

    # Reference: same math in plain JAX, using the same bf16-rounded weights and
    # the same bf16 activation casts so only accumulation order differs.
    w1p, b1p, w2p, b2p, w3p, b3p = params
    x2d = x.reshape(B, IN_DIM).astype(jnp.bfloat16).astype(jnp.float32)
    w1f = w1p.astype(jnp.float32)[:, :H1]
    b1f = b1p[:, :H1]
    w2f = w2p.astype(jnp.float32)[:H1, :H2]
    b2f = b2p[:, :H2]
    w3f = w3p.astype(jnp.float32)[:H2, :OUTPUT_SIZE]
    b3f = b3p[:, :OUTPUT_SIZE]

    ref = jnp.maximum(x2d @ w1f + b1f, 0.0)
    ref = jnp.maximum(ref.astype(jnp.bfloat16).astype(jnp.float32) @ w2f + b2f, 0.0)
    ref = ref.astype(jnp.bfloat16).astype(jnp.float32) @ w3f + b3f

    assert out.shape == (B, OUTPUT_SIZE)
    assert jnp.allclose(out, ref, atol=5e-3, rtol=5e-3)

    print("KERNEL_OK")
</pallas_src>

<mosaic_0001>
module attributes {stable_mosaic.version = 11 : i64} {
  func.func @lenet_kernel(%arg0: i32, %arg1: memref<16x784xf32, #tpu.memory_space<vmem>>, %arg2: memref<784x384xbf16, #tpu.memory_space<vmem>>, %arg3: memref<1x384xf32, #tpu.memory_space<vmem>>, %arg4: memref<384x128xbf16, #tpu.memory_space<vmem>>, %arg5: memref<1x128xf32, #tpu.memory_space<vmem>>, %arg6: memref<128x128xbf16, #tpu.memory_space<vmem>>, %arg7: memref<1x128xf32, #tpu.memory_space<vmem>>, %arg8: memref<16x128xf32, #tpu.memory_space<vmem>>) attributes {dimension_semantics = [#tpu.dimension_semantics<parallel>], iteration_bounds = array<i64: 2>, scalar_prefetch = 0 : i64, scratch_operands = 0 : i64, tpu.core_type = #tpu.core_type<tc>, window_params = [{transform_indices = @transform_0, window_bounds = array<i64: 16, 784>}, {pipeline_mode = #tpu.pipeline_mode<synchronous>, transform_indices = @transform_1, window_bounds = array<i64: 784, 384>}, {pipeline_mode = #tpu.pipeline_mode<synchronous>, transform_indices = @transform_2, window_bounds = array<i64: 1, 384>}, {pipeline_mode = #tpu.pipeline_mode<synchronous>, transform_indices = @transform_3, window_bounds = array<i64: 384, 128>}, {pipeline_mode = #tpu.pipeline_mode<synchronous>, transform_indices = @transform_4, window_bounds = array<i64: 1, 128>}, {pipeline_mode = #tpu.pipeline_mode<synchronous>, transform_indices = @transform_5, window_bounds = array<i64: 128, 128>}, {pipeline_mode = #tpu.pipeline_mode<synchronous>, transform_indices = @transform_6, window_bounds = array<i64: 1, 128>}, {transform_indices = @transform_7, window_bounds = array<i64: 16, 128>}]} {
    %c0 = arith.constant 0 : index
    %c0_0 = arith.constant 0 : index
    %0 = vector.load %arg1[%c0, %c0_0] : memref<16x784xf32, #tpu.memory_space<vmem>>, vector<16x784xf32>
    %1 = arith.truncf %0 : vector<16x784xf32> to vector<16x784xbf16>
    %c0_1 = arith.constant 0 : index
    %c0_2 = arith.constant 0 : index
    %2 = vector.load %arg2[%c0_1, %c0_2] : memref<784x384xbf16, #tpu.memory_space<vmem>>, vector<784x384xbf16>
    %cst = arith.constant dense<0.000000e+00> : vector<16x384xf32>
    %3 = tpu.matmul %1, %2, %cst {dimension_numbers = #tpu.dot_dimension_numbers<[1], [0], [0], [1], [0, 0, 1, 1], [], []>} : vector<16x784xbf16>, vector<784x384xbf16>, vector<16x384xf32> -> vector<16x384xf32>
    %c0_3 = arith.constant 0 : index
    %c0_4 = arith.constant 0 : index
    %4 = vector.load %arg3[%c0_3, %c0_4] : memref<1x384xf32, #tpu.memory_space<vmem>>, vector<1x384xf32>
    %5 = vector.broadcast %4 : vector<1x384xf32> to vector<16x384xf32>
    %6 = arith.addf %3, %5 : vector<16x384xf32>
    %cst_5 = arith.constant 0.000000e+00 : f32
    %7 = vector.broadcast %cst_5 : f32 to vector<16x384xf32>
    %8 = arith.maximumf %6, %7 : vector<16x384xf32>
    %9 = arith.truncf %8 : vector<16x384xf32> to vector<16x384xbf16>
    %c0_6 = arith.constant 0 : index
    %c0_7 = arith.constant 0 : index
    %10 = vector.load %arg4[%c0_6, %c0_7] : memref<384x128xbf16, #tpu.memory_space<vmem>>, vector<384x128xbf16>
    %cst_8 = arith.constant dense<0.000000e+00> : vector<16x128xf32>
    %11 = tpu.matmul %9, %10, %cst_8 {dimension_numbers = #tpu.dot_dimension_numbers<[1], [0], [0], [1], [0, 0, 1, 1], [], []>} : vector<16x384xbf16>, vector<384x128xbf16>, vector<16x128xf32> -> vector<16x128xf32>
    %c0_9 = arith.constant 0 : index
    %c0_10 = arith.constant 0 : index
    %12 = vector.load %arg5[%c0_9, %c0_10] : memref<1x128xf32, #tpu.memory_space<vmem>>, vector<1x128xf32>
    %13 = vector.broadcast %12 : vector<1x128xf32> to vector<16x128xf32>
    %14 = arith.addf %11, %13 : vector<16x128xf32>
    %cst_11 = arith.constant 0.000000e+00 : f32
    %15 = vector.broadcast %cst_11 : f32 to vector<16x128xf32>
    %16 = arith.maximumf %14, %15 : vector<16x128xf32>
    %17 = arith.truncf %16 : vector<16x128xf32> to vector<16x128xbf16>
    %c0_12 = arith.constant 0 : index
    %c0_13 = arith.constant 0 : index
    %18 = vector.load %arg6[%c0_12, %c0_13] : memref<128x128xbf16, #tpu.memory_space<vmem>>, vector<128x128xbf16>
    %cst_14 = arith.constant dense<0.000000e+00> : vector<16x128xf32>
    %19 = tpu.matmul %17, %18, %cst_14 {dimension_numbers = #tpu.dot_dimension_numbers<[1], [0], [0], [1], [0, 0, 1, 1], [], []>} : vector<16x128xbf16>, vector<128x128xbf16>, vector<16x128xf32> -> vector<16x128xf32>
    %c0_15 = arith.constant 0 : index
    %c0_16 = arith.constant 0 : index
    %20 = vector.load %arg7[%c0_15, %c0_16] : memref<1x128xf32, #tpu.memory_space<vmem>>, vector<1x128xf32>
    %21 = vector.broadcast %20 : vector<1x128xf32> to vector<16x128xf32>
    %22 = arith.addf %19, %21 : vector<16x128xf32>
    %c0_17 = arith.constant 0 : index
    %c0_18 = arith.constant 0 : index
    %23 = vector.load %arg8[%c0_17, %c0_18] : memref<16x128xf32, #tpu.memory_space<vmem>>, vector<16x128xf32>
    tpu.vector_store %arg8[%c0_17, %c0_18], %22 {strides = array<i32>} : memref<16x128xf32, #tpu.memory_space<vmem>>, vector<16x128xf32>,
    return
  }
  func.func @transform_0(%arg0: i32) -> (i32, i32) {
    %c0_i32 = arith.constant 0 : i32
    %c0_i32_0 = arith.constant 0 : i32
    return %arg0, %c0_i32 : i32, i32
  }
  func.func @transform_1(%arg0: i32) -> (i32, i32) {
    %c0_i32 = arith.constant 0 : i32
    %c0_i32_0 = arith.constant 0 : i32
    %c0_i32_1 = arith.constant 0 : i32
    return %c0_i32, %c0_i32_0 : i32, i32
  }
  func.func @transform_2(%arg0: i32) -> (i32, i32) {
    %c0_i32 = arith.constant 0 : i32
    %c0_i32_0 = arith.constant 0 : i32
    %c0_i32_1 = arith.constant 0 : i32
    return %c0_i32, %c0_i32_0 : i32, i32
  }
  func.func @transform_3(%arg0: i32) -> (i32, i32) {
    %c0_i32 = arith.constant 0 : i32
    %c0_i32_0 = arith.constant 0 : i32
    %c0_i32_1 = arith.constant 0 : i32
    return %c0_i32, %c0_i32_0 : i32, i32
  }
  func.func @transform_4(%arg0: i32) -> (i32, i32) {
    %c0_i32 = arith.constant 0 : i32
    %c0_i32_0 = arith.constant 0 : i32
    %c0_i32_1 = arith.constant 0 : i32
    return %c0_i32, %c0_i32_0 : i32, i32
  }
  func.func @transform_5(%arg0: i32) -> (i32, i32) {
    %c0_i32 = arith.constant 0 : i32
    %c0_i32_0 = arith.constant 0 : i32
    %c0_i32_1 = arith.constant 0 : i32
    return %c0_i32, %c0_i32_0 : i32, i32
  }
  func.func @transform_6(%arg0: i32) -> (i32, i32) {
    %c0_i32 = arith.constant 0 : i32
    %c0_i32_0 = arith.constant 0 : i32
    %c0_i32_1 = arith.constant 0 : i32
    return %c0_i32, %c0_i32_0 : i32, i32
  }
  func.func @transform_7(%arg0: i32) -> (i32, i32) {
    %c0_i32 = arith.constant 0 : i32
    %c0_i32_0 = arith.constant 0 : i32
    return %arg0, %c0_i32 : i32, i32
  }
}

</mosaic_0001>

<bundles_post_ra>
// kernel: lenet_forward.2
= control target key start
LH: loop header
LB: loop body
LE: loop exit
PB: predicated region body
PF: predicated region fallthrough
CT: control target
= control target key end

     0   :  { %s3479_s0 = inlined_call_operand.hbm [shape: bf16[784,384], index: 0, kind: input, shape index: {}]   ;;  %s3480_s1 = inlined_call_operand.vmem [shape: f32[1,384], index: 1, kind: input, shape index: {}]   ;;  %s3481_s2 = inlined_call_operand.vmem [shape: bf16[384,128], index: 2, kind: input, shape index: {}]   ;;  %s3482_s3 = inlined_call_operand.vmem [shape: f32[1,128], index: 3, kind: input, shape index: {}]   ;;  %s3483_s4 = inlined_call_operand.hbm [shape: bf16[128,128], index: 4, kind: input, shape index: {}]   ;;  %s3484_s5 = inlined_call_operand.vmem [shape: f32[1,128], index: 5, kind: input, shape index: {}]   ;;  %s3485_s6 = inlined_call_operand.vmem [shape: f32[2,784], index: 6, kind: input, shape index: {}]   ;;  %s3486_s7 = inlined_call_operand.<no memory space> [shape: f32[], index: 7, kind: input, shape index: {}]   ;;  %s3487_s8 = inlined_call_operand.vmem [shape: f32[32,128], index: 8, kind: output, shape index: {}]  }
   0x1   :  { %v3170_v0 = vstv %s3486_s7 }
   0x2   :  { %14 = vsyncpa [#allocation8], 0 }
   0x3   :  { %15 = vsyncpa [#allocation10], 0  ;;  %s3172_s29 = smov 0  }
   0x4 LB: > { %s3113_s30 = smov [#allocation7]   ;;  %s3178_s10 = sadd.s32 4294967295, %s3111_s29   ;;  %s3111_s29 = sphi %s3172_s29, %s21_s29  }
   0x5   : > { %s216_s9 = sshll.u32 %s3113_s30, 4  ;;  %p2389_p0 = scmp.ge.s32.totalorder %s3111_s29, 1  ;;  %s217_s9 = int_to_ptr.vmem [resolvable:$true] %s216_s9 }
   0x6   : > { %p204_p1 = scmp.lt.s32.totalorder %s3111_s29, 3  ;;  %p3488_p3 = scmp.eq.s32.totalorder %s3178_s10, 0 }
   0x7   : > { %s3114_s11 = smov [#allocation9]   ;;  %s3041_s16 = scalar_lea.hbm %s3479_s0, 18816 }
   0x8   : > { %p3182_p2 = pnand %p2389_p0, %p204_p1  ;;  %s238_s12 = sshll.u32 %s3114_s11, 4  ;;  %s3195_s12 = int_to_ptr.vmem [resolvable:$true] %s238_s12 }
   0x9   : > { %p3042_p6 = scmp.ne.s32.totalorder %s3479_s0, %s3041_s16  ;;  %p3048_p10 = scmp.lt.u32.totalorder %s3041_s16, %s3479_s0 }
   0xa   : > { %s3490_s7 = scalar_select %p3182_p2, 1, 0 }
   0xb   : > { %p2785_p4 = pneg %p3182_p2 }
   0xd   : > { %p3191_p5 = pnand %p3488_p3, %p2785_p4 }
   0xf   : > { %p3043_p7 = pneg %p3191_p5 }
  0x11   : > { %p3044_p8 = pnand %p3043_p7, %p3042_p6 }
  0x13   : > { %p3045_p9 = pneg %p3044_p8 }
  0x15   : > { %p3050_p11 = pnand %p3048_p10, %p3045_p9 }
  0x17   : > { %3053 = shalt.err (!%p3050_p11)
}
  0x18   : > { %s3054_s21 = scalar_lea.vmem %s217_s9, 18816  ;;  %p3062_p1 = scmp.lt.s32.totalorder %s217_s9, %s217_s9 }
  0x19   : > { %p3055_p12 = scmp.ne.s32.totalorder %s217_s9, %s3054_s21  ;;  %p3063_p4 = scmp.lt.s32.totalorder %s3054_s21, %s3054_s21 }
  0x1b   : > { %p3057_p13 = pnand %p3055_p12, %p3043_p7  ;;  %p3064_p3 = por %p3063_p4, %p3062_p1 }
  0x1d   : > { %p3058_p0 = pneg %p3057_p13 }
  0x1f   : > { %p3065_p2 = pnand %p3064_p3, %p3058_p0 }
  0x21   : > { %3068 = shalt.err (!%p3065_p2)
}
  0x22   : > { %s3115_s22 = smov 192   ;;  %s3116_s23 = smov 12  }
  0x23   : > { %2788 = dma.hbm_to_vmem [thread:$0]  (!%p3191_p5), %s3479_s0, 18816, %s217_s9, [#allocation8], %s3115_s22, %s3115_s22, %s3116_s23  }
  0x24   : > { %s3069_s28 = scalar_lea.hbm %s3483_s4, 1024 }
  0x25   : > { %p3070_p6 = scmp.ne.s32.totalorder %s3483_s4, %s3069_s28  ;;  %p3076_p8 = scmp.lt.u32.totalorder %s3069_s28, %s3483_s4 }
  0x27   : > { %p3072_p2 = pnand %p3070_p6, %p3043_p7 }
  0x29   : > { %p3073_p3 = pneg %p3072_p2 }
  0x2b   : > { %p3078_p9 = pnand %p3076_p8, %p3073_p3 }
  0x2d   : > { %3081 = shalt.err (!%p3078_p9)
}
  0x2e   : > { %s3082_s9 = scalar_lea.vmem %s3195_s12, 1024  ;;  %p3090_p13 = scmp.lt.s32.totalorder %s3195_s12, %s3195_s12 }
  0x2f   : > { %p3083_p10 = scmp.ne.s32.totalorder %s3195_s12, %s3082_s9  ;;  %p3091_p0 = scmp.lt.s32.totalorder %s3082_s9, %s3082_s9 }
  0x31   : > { %p3085_p11 = pnand %p3083_p10, %p3043_p7  ;;  %p3092_p1 = por %p3091_p0, %p3090_p13 }
  0x33   : > { %p3086_p12 = pneg %p3085_p11 }
  0x35   : > { %p3093_p4 = pnand %p3092_p1, %p3086_p12 }
  0x37   : > { %3096 = shalt.err (!%p3093_p4)
}
  0x38   : > { %s3117_s16 = smov 64   ;;  %s3118_s17 = smov 4  }
  0x39   : > { %2791 = dma.hbm_to_vmem [thread:$0]  (!%p3191_p5), %s3483_s4, 1024, %s3195_s12, [#allocation10], %s3117_s16, %s3117_s16, %s3118_s17  }
  0x3a   : > { %p3492_p6 = scmp.ne.s32.totalorder %s3490_s7, 0 }
  0x3b   : > { %p3493_p7 = scmp.eq.s32.totalorder (!%p3492_p6), %s3178_s10, 0 }
  0x3c   : > { %277 = sbr.rel (%p3492_p6) target bundleno = 968 (0x3c8), region = 48 }
  0x43   : > { %3102 = dma.done.wait (%p3493_p7), [#allocation8], 18816   ;;  %p3494_p2 = pmov %p3493_p7 }
  0x45   : > { %3104 = vsyncadd (%p3494_p2), [#allocation8], 4294948480  ;;  %p3495_p3 = pmov %p3494_p2 }
  0x46   : > { %p3496_p8 = pmov %p3494_p2 }
  0x47   : > { %3106 = dma.done.wait (%p3495_p3), [#allocation10], 1024  }
  0x48   : > { %3108 = vsyncadd (%p3496_p8), [#allocation10], 4294966272  ;;  %v2813_v1 = vld [vmem:[#allocation7 + $0x4] ss:$12 sps:$4 sm:$0xff]   ;;  %v2815_v2 = vld [vmem:[#allocation7] ss:$12 sps:$4 sm:$0xff]   ;;  %v353_v8 = vlaneseq }
  0x49   : > { %1566 = vmatprep.subr.bf16.mxu0 %v2813_v1  ;;  %v2816_v3 = vld [vmem:[#allocation7 + $0x1c] ss:$12 sps:$4 sm:$0xff]   ;;  %v2818_v4 = vld [vmem:[#allocation7 + $0x18] ss:$12 sps:$4 sm:$0xff]   ;;  %s3255_s7 = sshll.u32 %s3178_s10, 1  ;;  %s2599_s20 = sshll.u32 %s3178_s10, 4 }
  0x4a   : > { %1567 = vmatpush1.bf16.msra.mxu0 %v2815_v2  ;;  %v2819_v5 = vld [vmem:[#allocation7 + $0x34] ss:$12 sps:$4 sm:$0xff]   ;;  %p325_p5 = scmp.lt.s32.totalorder %s3255_s7, 0  ;;  %s342_s12 = ssub.s32 0, %s3255_s7  ;;  %v2821_v6 = vld [vmem:[#allocation7 + $0x30] ss:$12 sps:$4 sm:$0xff]   ;;  %v355_v12 = vstv %s2599_s20 }
  0x4b   : > { %1568 = vmatprep.subr.bf16.mxu0 %v2816_v3  ;;  %v2822_v7 = vld [vmem:[#allocation7 + $0x4c] ss:$12 sps:$4 sm:$0xff]   ;;  %p3259_p9 = scmp.lt.s32.totalorder %s342_s12, 0  ;;  %v2824_v9 = vld [vmem:[#allocation7 + $0x48] ss:$12 sps:$4 sm:$0xff]   ;;  %v3266_v11 = vshrl.u32 %v353_v8, 7  ;;  %v3270_v15 = vstv %s342_s12 }
  0x4c   : > { %s326_s21 = scalar_select %p325_p5, %s3255_s7, 0  ;;  %v2825_v10 = vld [vmem:[#allocation7 + $0x64] ss:$12 sps:$4 sm:$0xff]   ;;  %v2827_v13 = vld [vmem:[#allocation7 + $0x60] ss:$12 sps:$4 sm:$0xff]   ;;  %vm350_vm0 = vcmp.lt.s32.totalorder %v3270_v15, 0 }
  0x4d   : > { %s344_s22 = scalar_select %p3259_p9, 0, 255  ;;  %v2828_v14 = vld [vmem:[#allocation7 + $0x7c] ss:$12 sps:$4 sm:$0xff]   ;;  %v3273_v16 = vadd.s32 %v355_v12, %v3266_v11  ;;  %v2830_v17 = vld [vmem:[#allocation7 + $0x78] ss:$12 sps:$4 sm:$0xff]  }
  0x4e   : > { %1569 = vmatpush1.bf16.msra.mxu0 %v2818_v4  ;;  %s2776_s23 = smul.u32 14, %s326_s21  ;;  %v2831_v18 = vld [vmem:[#allocation7 + $0x94] ss:$12 sps:$4 sm:$0xff]   ;;  %v2833_v21 = vld [vmem:[#allocation7 + $0x90] ss:$12 sps:$4 sm:$0xff]   ;;  %vm1562_vm3 = vcmask 130048  }
  0x4f   : > { %1570 = vmatprep.subr.bf16.mxu0 %v2819_v5  ;;  %s3280_s26 = sand.u32 3, %s344_s22  ;;  %vm357_vm1 = vcmp.lt.s32.totalorder %v3273_v16, 2  ;;  %v2834_v23 = vld [vmem:[#allocation7 + $0xac] ss:$12 sps:$4 sm:$0xff]   ;;  %v2867_v25 = vld [vmem:[#allocation7 + $0xc8] ss:$12 sps:$4 sm:$0xff]  }
  0x50   : > { %s3278_s25 = scalar_lea.vmem %s3485_s6, %s2776_s23  ;;  %v2868_v26 = vld [vmem:[#allocation7 + $0x8] ss:$12 sps:$4 sm:$0xff]   ;;  %v2837_v28 = vld [vmem:[#allocation7 + $0xc4] ss:$12 sps:$4 sm:$0xff]   ;;  %2606 = vmatprep.subr.bf16.mxu1 %v2867_v25  ;;  %v2872_v29 = vld [vmem:[#allocation7 + $0xe0] ss:$12 sps:$4 sm:$0xff]  }
  0x51   : > { %v2402_v19 = vld [vmem:[%s3278_s25 + $0x2] sm:%s3280_s26]  ;;  %2607 = vmatpush3.bf16.msra.mxu1 %v2868_v26  ;;  %v2882_v37 = vld [vmem:[#allocation7 + $0x110] ss:$12 sps:$4 sm:$0xff]   ;;  %v2846_v41 = vld [vmem:[#allocation7 + $0x10c] ss:$12 sps:$4 sm:$0xff]   ;;  %vm3120_vm4 = vmmov 0  }
  0x52   : > { %1571 = vmatpush1.bf16.msra.mxu0 %v2821_v6  ;;  %v376_v20 = vsel %vm350_vm0, %v3170_v0, %v2402_v19  ;;  %v2836_v27 = vld [vmem:[#allocation7 + $0xa8] ss:$12 sps:$4 sm:$0xff]   ;;  %v2873_v30 = vld [vmem:[#allocation7 + $0x20] ss:$12 sps:$4 sm:$0xff]   ;;  %2608 = vmatprep.subr.bf16.mxu1 %v2872_v29  ;;  %v2877_v33 = vld [vmem:[#allocation7 + $0xf8] ss:$12 sps:$4 sm:$0xff]  }
  0x53   : > { %1572 = vmatprep.subr.bf16.mxu0 %v2822_v7  ;;  %v383_v22 = vsel %vm357_vm1, %v376_v20, %v3170_v0  ;;  %v2839_v31 = vld [vmem:[#allocation7 + $0xc0] ss:$12 sps:$4 sm:$0xff]   ;;  %v2840_v32 = vld [vmem:[#allocation7 + $0xdc] ss:$12 sps:$4 sm:$0xff]   ;;  %v2878_v34 = vld [vmem:[#allocation7 + $0x38] ss:$12 sps:$4 sm:$0xff]  }
  0x54   : > { %v559_v24 = vpack.c.bf16 %v3170_v0, %v383_v22  ;;  %v2842_v35 = vld [vmem:[#allocation7 + $0xd8] ss:$12 sps:$4 sm:$0xff]   ;;  %v2843_v36 = vld [vmem:[#allocation7 + $0xf4] ss:$12 sps:$4 sm:$0xff]   ;;  %v2883_v38 = vld [vmem:[#allocation7 + $0x50] ss:$12 sps:$4 sm:$0xff]  }
  0x55   : > { %2609 = vmatpush3.bf16.msra.mxu1 %v2873_v30  ;;  %v2845_v39 = vld [vmem:[#allocation7 + $0xf0] ss:$12 sps:$4 sm:$0xff]   ;;  %v2887_v40 = vld [vmem:[#allocation7 + $0x128] ss:$12 sps:$4 sm:$0xff]   ;;  %v2892_v43 = vld [vmem:[#allocation7 + $0x140] ss:$12 sps:$4 sm:$0xff]  }
  0x56   : > { %1573 = vmatpush1.bf16.msra.mxu0 %v2824_v9  ;;  %1598 = vmatprep.mubr.bf16.mxu0 %v559_v24  ;;  %v2888_v42 = vld [vmem:[#allocation7 + $0x68] ss:$12 sps:$4 sm:$0xff]   ;;  %v2849_v45 = vld [vmem:[#allocation7 + $0x124] ss:$12 sps:$4 sm:$0xff]   ;;  %v2893_v46 = vld [vmem:[#allocation7 + $0x80] ss:$12 sps:$4 sm:$0xff]  }
  0x57   : > { %1574 = vmatprep.subr.bf16.mxu0 %v2825_v10  ;;  %1770 = vmatprep.mubr.bf16.mxu1 %v559_v24  ;;  %v2848_v44 = vld [vmem:[#allocation7 + $0x108] ss:$12 sps:$4 sm:$0xff]   ;;  %v2897_v47 = vld [vmem:[#allocation7 + $0x158] ss:$12 sps:$4 sm:$0xff]   ;;  %v2851_v48 = vld [vmem:[#allocation7 + $0x120] ss:$12 sps:$4 sm:$0xff]  }
  0x58   : > { %2610 = vmatprep.subr.bf16.mxu1 %v2877_v33  ;;  %v2852_v49 = vld [vmem:[#allocation7 + $0x13c] ss:$12 sps:$4 sm:$0xff]   ;;  %v347_v50 = vld [vmem:[%s3278_s25] sm:%s3280_s26]  ;;  %v2858_v60 = vld [vmem:[#allocation7 + $0x16c] ss:$12 sps:$4 sm:$0xff]   ;;  %p337_p10 = scmp.lt.s32.totalorder %s3255_s7, 3 }
  0x59   : > { %2611 = vmatpush3.bf16.msra.mxu1 %v2878_v34  ;;  %v2898_v51 = vld [vmem:[#allocation7 + $0x98] ss:$12 sps:$4 sm:$0xff]   ;;  %v2902_v52 = vld [vmem:[#allocation7 + $0x170] ss:$12 sps:$4 sm:$0xff]   ;;  %v2855_v54 = vld [vmem:[#allocation7 + $0x154] ss:$12 sps:$4 sm:$0xff]   ;;  %v351_v55 = vsel %vm350_vm0, %v3170_v0, %v347_v50 }
  0x5a   : > { %1575 = vmatpush1.bf16.msra.mxu0 %v2827_v13  ;;  %2612 = vmatprep.subr.bf16.mxu1 %v2882_v37  ;;  %v2854_v53 = vld [vmem:[#allocation7 + $0x138] ss:$12 sps:$4 sm:$0xff]   ;;  %v2903_v56 = vld [vmem:[#allocation7 + $0xb0] ss:$12 sps:$4 sm:$0xff]   ;;  %v2907_v57 = vld [vmem:[#allocation7 + $0x248] ss:$12 sps:$4 sm:$0xff]   ;;  %v358_v59 = vsel %vm357_vm1, %v351_v55, %v3170_v0 }
  0x5b   : > { %1576 = vmatprep.subr.bf16.mxu0 %v2828_v14  ;;  %v2857_v58 = vld [vmem:[#allocation7 + $0x150] ss:$12 sps:$4 sm:$0xff]   ;;  %v2908_v61 = vld [vmem:[#allocation7 + $0x188] ss:$12 sps:$4 sm:$0xff]   ;;  %v558_v62 = vpack.c.bf16 %v3170_v0, %v358_v59  ;;  %v2912_v63 = vld [vmem:[#allocation7 + $0x260] ss:$12 sps:$4 sm:$0xff]  }
  0x5c   : > { %v2860_v1 = vld [vmem:[#allocation7 + $0x168] ss:$12 sps:$4 sm:$0xff]   ;;  %v2863_v2 = vld [vmem:[#allocation7 + $0x184] ss:$12 sps:$4 sm:$0xff]   ;;  %v2913_v3 = vld [vmem:[#allocation7 + $0x1a0] ss:$12 sps:$4 sm:$0xff]  }
  0x5d   : > { %2613 = vmatpush3.bf16.msra.mxu1 %v2883_v38  ;;  %v2917_v4 = vld [vmem:[#allocation7 + $0x278] ss:$12 sps:$4 sm:$0xff]   ;;  %v2861_v5 = vld [vmem:[#allocation7 + $0x180] ss:$12 sps:$4 sm:$0xff]   ;;  %v2866_v6 = vld [vmem:[#allocation7 + $0x19c] ss:$12 sps:$4 sm:$0xff]  }
  0x5e   : > { %1577 = vmatpush1.bf16.msra.mxu0 %v2830_v17  ;;  %2614 = vmatprep.subr.bf16.mxu1 %v2887_v40  ;;  %v2918_v7 = vld [vmem:[#allocation7 + $0x1b8] ss:$12 sps:$4 sm:$0xff]   ;;  %v2922_v9 = vld [vmem:[#allocation7 + $0x290] ss:$12 sps:$4 sm:$0xff]   ;;  %v2871_v12 = vld [vmem:[#allocation7 + $0x1b4] ss:$12 sps:$4 sm:$0xff]  }
  0x5f   : > { %1578 = vmatprep.subr.bf16.mxu0 %v2831_v18  ;;  %v2864_v10 = vld [vmem:[#allocation7 + $0x198] ss:$12 sps:$4 sm:$0xff]   ;;  %v2923_v13 = vld [vmem:[#allocation7 + $0x1d0] ss:$12 sps:$4 sm:$0xff]   ;;  %v2927_v14 = vld [vmem:[#allocation7 + $0x2a8] ss:$12 sps:$4 sm:$0xff]  }
  0x60   : > { %v2869_v17 = vld [vmem:[#allocation7 + $0x1b0] ss:$12 sps:$4 sm:$0xff]   ;;  %v2876_v18 = vld [vmem:[#allocation7 + $0x1cc] ss:$12 sps:$4 sm:$0xff]   ;;  %v2928_v19 = vld [vmem:[#allocation7 + $0x1e8] ss:$12 sps:$4 sm:$0xff]  }
  0x61   : > { %2615 = vmatpush3.bf16.msra.mxu1 %v2888_v42  ;;  %v2932_v20 = vld [vmem:[#allocation7 + $0x2c0] ss:$12 sps:$4 sm:$0xff]   ;;  %v2874_v22 = vld [vmem:[#allocation7 + $0x1c8] ss:$12 sps:$4 sm:$0xff]   ;;  %v2881_v24 = vld [vmem:[#allocation7 + $0x1e4] ss:$12 sps:$4 sm:$0xff]  }
  0x62   : > { %1579 = vmatpush1.bf16.msra.mxu0 %v2833_v21  ;;  %2616 = vmatprep.subr.bf16.mxu1 %v2892_v43  ;;  %v2406_v21 = vld [vmem:[%s3278_s25 + $0x6] sm:%s3280_s26]  ;;  %v2942_v33 = vld [vmem:[#allocation7 + $0x2f0] ss:$12 sps:$4 sm:$0xff]   ;;  %s3499_s7 = smov (!%p337_p10, %s3255_s7), 3 }
  0x63   : > { %1580 = vmatprep.subr.bf16.mxu0 %v2834_v23  ;;  %v428_v23 = vsel %vm350_vm0, %v3170_v0, %v2406_v21  ;;  %v2933_v26 = vld [vmem:[#allocation7 + $0x200] ss:$12 sps:$4 sm:$0xff]   ;;  %v2886_v30 = vld [vmem:[#allocation7 + $0x1fc] ss:$12 sps:$4 sm:$0xff]   ;;  %v2884_v34 = vld [vmem:[#allocation7 + $0x1f8] ss:$12 sps:$4 sm:$0xff]  }
  0x64   : > { %v435_v25 = vsel %vm357_vm1, %v428_v23, %v3170_v0  ;;  %v2879_v29 = vld [vmem:[#allocation7 + $0x1e0] ss:$12 sps:$4 sm:$0xff]   ;;  %v2943_v37 = vld [vmem:[#allocation7 + $0x230] ss:$12 sps:$4 sm:$0xff]   ;;  %v2947_v38 = vld [vmem:[#allocation7 + $0x3c8] ss:$12 sps:$4 sm:$0xff]  }
  0x65   : > { %2617 = vmatpush3.bf16.msra.mxu1 %v2893_v46  ;;  %v2889_v40 = vld [vmem:[#allocation7 + $0x210] ss:$12 sps:$4 sm:$0xff]   ;;  %v2948_v42 = vld [vmem:[#allocation7 + $0x308] ss:$12 sps:$4 sm:$0xff]   ;;  %v2936_v23 = vld [vmem:[#allocation7 + $0x2ec] ss:$12 sps:$4 sm:$0xff]  }
  0x66   : > { %1581 = vmatpush1.bf16.msra.mxu0 %v2836_v27  ;;  %2618 = vmatprep.subr.bf16.mxu1 %v2897_v47  ;;  %v561_v27 = vpack.c.bf16 %v3170_v0, %v435_v25  ;;  %v2901_v46 = vld [vmem:[#allocation7 + $0x244] ss:$12 sps:$4 sm:$0xff]   ;;  %v2953_v47 = vld [vmem:[#allocation7 + $0x320] ss:$12 sps:$4 sm:$0xff]   ;;  %v2906_v50 = vld [vmem:[#allocation7 + $0x25c] ss:$12 sps:$4 sm:$0xff]  }
  0x67   : > { %1582 = vmatprep.subr.bf16.mxu0 %v2837_v28  ;;  %v2937_v28 = vld [vmem:[#allocation7 + $0x2d8] ss:$12 sps:$4 sm:$0xff]   ;;  %v2963_v55 = vld [vmem:[#allocation7 + $0x350] ss:$12 sps:$4 sm:$0xff]   ;;  %v2968_v59 = vld [vmem:[#allocation7 + $0x368] ss:$12 sps:$4 sm:$0xff]  }
  0x68   : > { %v2944_v16 = vld [vmem:[#allocation7 + $0x318] ss:$12 sps:$4 sm:$0xff]   ;;  %s2400_s19 = sshll.u32 %s3499_s7, 3 }
  0x69   : > { %2619 = vmatpush3.bf16.msra.mxu1 %v2898_v51  ;;  %v2958_v51 = vld [vmem:[#allocation7 + $0x338] ss:$12 sps:$4 sm:$0xff]   ;;  %s340_s22 = scalar_lea.vmem %s3487_s8, %s2400_s19 }
  0x6a   : > { %1583 = vmatpush1.bf16.msra.mxu0 %v2839_v31  ;;  %2620 = vmatprep.subr.bf16.mxu1 %v2902_v52  ;;  %v2938_v31 = vld [vmem:[#allocation7 + $0x218] ss:$12 sps:$4 sm:$0xff]   ;;  %v2962_v52 = vld [vmem:[#allocation7 + $0x410] ss:$12 sps:$4 sm:$0xff]  }
  0x6b   : > { %1584 = vmatprep.subr.bf16.mxu0 %v2840_v32  ;;  %v2404_v32 = vld [vmem:[%s3278_s25 + $0x4] sm:%s3280_s26] }
  0x6d   : > { %2621 = vmatpush3.bf16.msra.mxu1 %v2903_v56  ;;  %v2909_v56 = vld [vmem:[#allocation7 + $0x270] ss:$12 sps:$4 sm:$0xff]  }
  0x6e   : > { %1585 = vmatpush1.bf16.msra.mxu0 %v2842_v35  ;;  %2628 = vmatprep.subr.bf16.mxu1 %v2907_v57  ;;  %v2891_v35 = vld [vmem:[#allocation7 + $0x214] ss:$12 sps:$4 sm:$0xff]  }
  0x6f   : > { %1586 = vmatprep.subr.bf16.mxu0 %v2843_v36  ;;  %v402_v36 = vsel %vm350_vm0, %v3170_v0, %v2404_v32  ;;  %v2967_v57 = vld [vmem:[#allocation7 + $0x428] ss:$12 sps:$4 sm:$0xff]  }
  0x70   : > { %1771 = vmatmul.mubr.bf16.vlgmr.msra.gmra.mrb[0].mxu1 %v558_v62  ;;  %v2946_v32 = vld [vmem:[#allocation7 + $0x31c] ss:$12 sps:$4 sm:$0xff]  }
  0x71   : > { %2629 = vmatpush3.bf16.msra.mxu1 %v2908_v61  ;;  %1811 = vmatprep.mubr.bf16.mxu1 %v561_v27  ;;  %v2972_v61 = vld [vmem:[#allocation7 + $0x440] ss:$12 sps:$4 sm:$0xff]  }
  0x72   : > { %1587 = vmatpush1.bf16.msra.mxu0 %v2845_v39  ;;  %2630 = vmatprep.subr.bf16.mxu1 %v2912_v63  ;;  %v409_v39 = vsel %vm357_vm1, %v402_v36, %v3170_v0  ;;  %v2914_v63 = vld [vmem:[#allocation7 + $0x288] ss:$12 sps:$4 sm:$0xff]   ;;  %v2956_v36 = vld [vmem:[#allocation7 + $0x34c] ss:$12 sps:$4 sm:$0xff]  }
  0x73   : > { %1588 = vmatprep.subr.bf16.mxu0 %v2846_v41  ;;  %v2896_v41 = vld [vmem:[#allocation7 + $0x22c] ss:$12 sps:$4 sm:$0xff]   ;;  %v3320_v43 = vpack.c.bf16 %v3170_v0, %v409_v39 }
  0x74   : > { %v2959_v39 = vld [vmem:[#allocation7 + $0x360] ss:$12 sps:$4 sm:$0xff]  }
  0x75   : > { %2631 = vmatpush3.bf16.msra.mxu1 %v2913_v3  ;;  %v2921_v3 = vld [vmem:[#allocation7 + $0x2a4] ss:$12 sps:$4 sm:$0xff]  }
  0x76   : > { %1589 = vmatpush1.bf16.msra.mxu0 %v2848_v44  ;;  %2632 = vmatprep.subr.bf16.mxu1 %v2917_v4  ;;  %v2952_v44 = vld [vmem:[#allocation7 + $0x3e0] ss:$12 sps:$4 sm:$0xff]  }
  0x77   : > { %1590 = vmatprep.subr.bf16.mxu0 %v2849_v45  ;;  %v2894_v45 = vld [vmem:[#allocation7 + $0x228] ss:$12 sps:$4 sm:$0xff]  }
  0x79   : > { %2633 = vmatpush3.bf16.msra.mxu1 %v2918_v7  ;;  %v2408_v7 = vld [vmem:[%s3278_s25 + $0x8] sm:%s3280_s26] }
  0x7a   : > { %1591 = vmatpush1.bf16.msra.mxu0 %v2851_v48  ;;  %2634 = vmatprep.subr.bf16.mxu1 %v2922_v9  ;;  %v2957_v48 = vld [vmem:[#allocation7 + $0x3f8] ss:$12 sps:$4 sm:$0xff]   ;;  %v2919_v9 = vld [vmem:[#allocation7 + $0x2a0] ss:$12 sps:$4 sm:$0xff]  }
  0x7b   : > { %1592 = vmatprep.subr.bf16.mxu0 %v2852_v49  ;;  %v2899_v49 = vld [vmem:[#allocation7 + $0x240] ss:$12 sps:$4 sm:$0xff]  }
  0x7d   : > { %2635 = vmatpush3.bf16.msra.mxu1 %v2923_v13  ;;  %v2982_v13 = vld [vmem:[#allocation7 + $0x470] ss:$12 sps:$4 sm:$0xff]  }
  0x7e   : > { %1593 = vmatpush1.bf16.msra.mxu0 %v2854_v53  ;;  %2636 = vmatprep.subr.bf16.mxu1 %v2927_v14  ;;  %v2904_v53 = vld [vmem:[#allocation7 + $0x258] ss:$12 sps:$4 sm:$0xff]   ;;  %v454_v14 = vsel %vm350_vm0, %v3170_v0, %v2408_v7  ;;  %v3014_v7 = vld [vmem:[%s3481_s2 + $0x10] sm:$0xff]  }
  0x7f   : > { %1594 = vmatprep.subr.bf16.mxu0 %v2855_v54  ;;  %v2911_v54 = vld [vmem:[#allocation7 + $0x274] ss:$12 sps:$4 sm:$0xff]   ;;  %v461_v21 = vsel %vm357_vm1, %v454_v14, %v3170_v0  ;;  %v3020_v14 = vld [vmem:[%s3481_s2 + $0x28] sm:$0xff]  }
  0x81   : > { %2637 = vmatpush3.bf16.msra.mxu1 %v2928_v19  ;;  %v2931_v19 = vld [vmem:[#allocation7 + $0x2d4] ss:$12 sps:$4 sm:$0xff]  }
  0x82   : > { %1595 = vmatpush1.bf16.msra.mxu0 %v2857_v58  ;;  %2638 = vmatprep.subr.bf16.mxu1 %v2932_v20  ;;  %v2916_v58 = vld [vmem:[#allocation7 + $0x28c] ss:$12 sps:$4 sm:$0xff]   ;;  %v2983_v20 = vld [vmem:[#allocation7 + $0x3b0] ss:$12 sps:$4 sm:$0xff]  }
  0x83   : > { %1596 = vmatprep.subr.bf16.mxu0 %v2858_v60  ;;  %v2410_v60 = vld [vmem:[%s3278_s25 + $0xa] sm:%s3280_s26] }
  0x85   : > { %2639 = vmatpush3.bf16.msra.mxu1 %v2933_v26  ;;  %v3347_v26 = vpack.c.bf16 %v3170_v0, %v461_v21 }
  0x86   : > { %1597 = vmatpush1.bf16.msra.mxu0 %v2860_v1  ;;  %2640 = vmatprep.subr.bf16.mxu1 %v2937_v28  ;;  %v3119_v28 = vmov 0.0  }
  0x87   : > { %1609 = vmatprep.subr.bf16.mxu0 %v2863_v2  ;;  %v515_v2 = vand.u32 127, %v353_v8  ;;  %v2978_v8 = vld [vmem:[#allocation7 + $0x398] ss:$12 sps:$4 sm:$0xff]  }
  0x89   : > { %1599 = vmatmul.mubr.bf16.vlgmr.msra.gmra.mrb[0].mxu0 %v558_v62  ;;  %2641 = vmatpush3.bf16.msra.mxu1 %v2938_v31  ;;  %v480_v62 = vsel %vm350_vm0, %v3170_v0, %v2410_v60  ;;  %v2939_v31 = vld [vmem:[#allocation7 + $0x300] ss:$12 sps:$4 sm:$0xff]  }
  0x8a   : > { %1610 = vmatpush1.bf16.msra.mxu0 %v2861_v5  ;;  %1641 = vmatprep.mubr.bf16.mxu0 %v561_v27  ;;  %v487_v1 = vsel %vm357_vm1, %v480_v62, %v3170_v0  ;;  %v2973_v5 = vld [vmem:[#allocation7 + $0x380] ss:$12 sps:$4 sm:$0xff]   ;;  %v2934_v27 = vld [vmem:[#allocation7 + $0x2e8] ss:$12 sps:$4 sm:$0xff]   ;;  %v3008_v62 = vld [vmem:[#allocation7 + $0x484] ss:$12 sps:$4 sm:$0xff]  }
  0x8b   : > { %1611 = vmatprep.subr.bf16.mxu0 %v2866_v6  ;;  %2642 = vmatprep.subr.bf16.mxu1 %v2942_v33  ;;  %v563_v4 = vpack.c.bf16 %v3170_v0, %v487_v1  ;;  %v2977_v6 = vld [vmem:[#allocation7 + $0x458] ss:$12 sps:$4 sm:$0xff]   ;;  %v3121_v1 = vmov 0  }
  0x8c   : > { %v3005_v60 = vld [vmem:[#allocation7 + $0x46c] ss:$12 sps:$4 sm:$0xff]  }
  0x8d   : > { %2643 = vmatpush3.bf16.msra.mxu1 %v2943_v37  ;;  %v2954_v37 = vld [vmem:[#allocation7 + $0x348] ss:$12 sps:$4 sm:$0xff]  }
  0x8e   : > { %1612 = vmatpush1.bf16.msra.mxu0 %v2864_v10  ;;  %2650 = vmatprep.subr.bf16.mxu1 %v2947_v38  ;;  %v516_v10 = vadd.s32 768, %v515_v2  ;;  %v2961_v38 = vld [vmem:[#allocation7 + $0x364] ss:$12 sps:$4 sm:$0xff]  }
  0x8f   : > { %1613 = vmatprep.subr.bf16.mxu0 %v2871_v12  ;;  %v2926_v12 = vld [vmem:[#allocation7 + $0x2bc] ss:$12 sps:$4 sm:$0xff]   ;;  %v3009_v2 = vld [vmem:[%s3481_s2 + $0x40] sm:$0xff]  }
  0x90   : > { %1812 = vmatmul.mubr.bf16.vlgmr.msra.gmra.mrb[4].mxu1 %v3320_v43  ;;  %vm517_vm2 = vcmp.lt.s32.totalorder %v516_v10, 784  ;;  %v3016_v10 = vld [vmem:[%s3481_s2 + $0x18] sm:$0xff]  }
  0x91   : > { %2651 = vmatpush3.bf16.msra.mxu1 %v2948_v42  ;;  %1852 = vmatprep.mubr.bf16.mxu1 %v563_v4  ;;  %v2971_v42 = vld [vmem:[#allocation7 + $0x394] ss:$12 sps:$4 sm:$0xff]  }
  0x92   : > { %1614 = vmatpush1.bf16.msra.mxu0 %v2869_v17  ;;  %2652 = vmatprep.subr.bf16.mxu1 %v2952_v44  ;;  %v2924_v17 = vld [vmem:[#allocation7 + $0x2b8] ss:$12 sps:$4 sm:$0xff]  }
  0x93   : > { %1615 = vmatprep.subr.bf16.mxu0 %v2876_v18  ;;  %v2412_v18 = vld [vmem:[%s3278_s25 + $0xc] sm:%s3280_s26] }
  0x94   : > { %v506_v25 = vsel %vm350_vm0, %v3170_v0, %v2412_v18  ;;  %v2976_v44 = vld [vmem:[#allocation7 + $0x3ac] ss:$12 sps:$4 sm:$0xff]  }
  0x95   : > { %2653 = vmatpush3.bf16.msra.mxu1 %v2953_v47  ;;  %v2979_v47 = vld [vmem:[#allocation7 + $0x3c0] ss:$12 sps:$4 sm:$0xff]  }
  0x96   : > { %1616 = vmatpush1.bf16.msra.mxu0 %v2874_v22  ;;  %2654 = vmatprep.subr.bf16.mxu1 %v2957_v48  ;;  %v2929_v22 = vld [vmem:[#allocation7 + $0x2d0] ss:$12 sps:$4 sm:$0xff]  }
  0x97   : > { %1617 = vmatprep.subr.bf16.mxu0 %v2881_v24  ;;  %v2990_v24 = vld [vmem:[#allocation7 + $0x488] ss:$12 sps:$4 sm:$0xff]  }
  0x98   : > { %v2986_v48 = vld [vmem:[#allocation7 + $0x3dc] ss:$12 sps:$4 sm:$0xff]  }
  0x99   : > { %2655 = vmatpush3.bf16.msra.mxu1 %v2958_v51  ;;  %v2987_v51 = vld [vmem:[#allocation7 + $0x3f0] ss:$12 sps:$4 sm:$0xff]  }
  0x9a   : > { %1618 = vmatpush1.bf16.msra.mxu0 %v2879_v29  ;;  %2656 = vmatprep.subr.bf16.mxu1 %v2962_v52  ;;  %v513_v29 = vsel %vm357_vm1, %v506_v25, %v3170_v0  ;;  %v2993_v52 = vld [vmem:[#allocation7 + $0x40c] ss:$12 sps:$4 sm:$0xff]  }
  0x9b   : > { %1619 = vmatprep.subr.bf16.mxu0 %v2886_v30  ;;  %v2941_v30 = vld [vmem:[#allocation7 + $0x304] ss:$12 sps:$4 sm:$0xff]   ;;  %v518_v15 = vsel %vm517_vm2, %v513_v29, %v3170_v0  ;;  %v3023_v25 = vld [vmem:[%s3481_s2 + $0x78] sm:$0xff]   ;;  %v761_v29 = vld [vmem:[%s3480_s1] sm:$0x7] }
  0x9c   : > { %v3359_v33 = vpack.c.bf16 %v3170_v0, %v518_v15 }
  0x9d   : > { %2657 = vmatpush3.bf16.msra.mxu1 %v2963_v55  ;;  %v2994_v55 = vld [vmem:[#allocation7 + $0x420] ss:$12 sps:$4 sm:$0xff]  }
  0x9e   : > { %1620 = vmatpush1.bf16.msra.mxu0 %v2884_v34  ;;  %2658 = vmatprep.subr.bf16.mxu1 %v2967_v57  ;;  %v2951_v34 = vld [vmem:[#allocation7 + $0x334] ss:$12 sps:$4 sm:$0xff]   ;;  %v2997_v57 = vld [vmem:[#allocation7 + $0x438] ss:$12 sps:$4 sm:$0xff]  }
  0x9f   : > { %1621 = vmatprep.subr.bf16.mxu0 %v2891_v35  ;;  %v2949_v35 = vld [vmem:[#allocation7 + $0x330] ss:$12 sps:$4 sm:$0xff]  }
  0xa1   : > { %2659 = vmatpush3.bf16.msra.mxu1 %v2968_v59  ;;  %v3000_v59 = vld [vmem:[#allocation7 + $0x450] ss:$12 sps:$4 sm:$0xff]  }
  0xa2   : > { %1622 = vmatpush1.bf16.msra.mxu0 %v2889_v40  ;;  %2660 = vmatprep.subr.bf16.mxu1 %v2972_v61  ;;  %v2966_v40 = vld [vmem:[#allocation7 + $0x37c] ss:$12 sps:$4 sm:$0xff]  }
  0xa3   : > { %1623 = vmatprep.subr.bf16.mxu0 %v2896_v41  ;;  %v2964_v41 = vld [vmem:[#allocation7 + $0x378] ss:$12 sps:$4 sm:$0xff]   ;;  %v3003_v61 = vld [vmem:[#allocation7 + $0x468] ss:$12 sps:$4 sm:$0xff]  }
  0xa5   : > { %2661 = vmatpush3.bf16.msra.mxu1 %v2973_v5  ;;  %v3012_v5 = vld [vmem:[%s3481_s2 + $0x8] sm:$0xff]  }
  0xa6   : > { %1624 = vmatpush1.bf16.msra.mxu0 %v2894_v45  ;;  %2662 = vmatprep.subr.bf16.mxu1 %v2977_v6  ;;  %v2974_v45 = vld [vmem:[#allocation7 + $0x3a8] ss:$12 sps:$4 sm:$0xff]  }
  0xa7   : > { %1625 = vmatprep.subr.bf16.mxu0 %v2901_v46  ;;  %v2981_v46 = vld [vmem:[#allocation7 + $0x3c4] ss:$12 sps:$4 sm:$0xff]  }
  0xa8   : > { %v3013_v6 = vld [vmem:[%s3481_s2 + $0x50] sm:$0xff]  }
  0xa9   : > { %2663 = vmatpush3.bf16.msra.mxu1 %v2978_v8  ;;  %v3018_v8 = vld [vmem:[%s3481_s2 + $0x20] sm:$0xff]  }
  0xaa   : > { %1626 = vmatpush1.bf16.msra.mxu0 %v2899_v49  ;;  %2664 = vmatprep.subr.bf16.mxu1 %v2982_v13  ;;  %v2984_v49 = vld [vmem:[#allocation7 + $0x3d8] ss:$12 sps:$4 sm:$0xff]   ;;  %v3019_v13 = vld [vmem:[%s3481_s2 + $0x68] sm:$0xff]  }
  0xab   : > { %1627 = vmatprep.subr.bf16.mxu0 %v2906_v50  ;;  %v2989_v50 = vld [vmem:[#allocation7 + $0x3f4] ss:$12 sps:$4 sm:$0xff]  }
  0xad   : > { %2665 = vmatpush3.bf16.msra.mxu1 %v2983_v20 }
  0xae   : > { %1628 = vmatpush1.bf16.msra.mxu0 %v2904_v53  ;;  %2714 = vmatprep.subr.bf16.mxu1 %v3119_v28  ;;  %v2991_v53 = vld [vmem:[#allocation7 + $0x408] ss:$12 sps:$4 sm:$0xff]  }
  0xaf   : > { %1629 = vmatprep.subr.bf16.mxu0 %v2911_v54  ;;  %v2996_v54 = vld [vmem:[#allocation7 + $0x424] ss:$12 sps:$4 sm:$0xff]  }
  0xb0   : > { %1853 = vmatmul.mubr.bf16.vlgmr.msra.gmra.mrb[8].mxu1 %v3347_v26 }
  0xb1   : > { %2715 = vmatpush3.bf16.msra.mxu1 %v2990_v24  ;;  %2716 = vmatprep.mubr.msk.bf16.mxu1 %vm3120_vm4, %v3119_v28  ;;  %v3022_v24 = vld [vmem:[%s3481_s2 + $0x30] sm:$0xff]  }
  0xb2   : > { %1630 = vmatpush1.bf16.msra.mxu0 %v2909_v56  ;;  %v2999_v56 = vld [vmem:[#allocation7 + $0x43c] ss:$12 sps:$4 sm:$0xff]   ;;  %2674 = vmatprep.subr.bf16.mxu1 %v3009_v2 }
  0xb3   : > { %1631 = vmatprep.subr.bf16.mxu0 %v2916_v58  ;;  %v3002_v58 = vld [vmem:[#allocation7 + $0x454] ss:$12 sps:$4 sm:$0xff]  }
  0xb6   : > { %1632 = vmatpush1.bf16.msra.mxu0 %v2914_v63  ;;  %v3006_v63 = vld [vmem:[#allocation7 + $0x480] ss:$12 sps:$4 sm:$0xff]  }
  0xb7   : > { %1633 = vmatprep.subr.bf16.mxu0 %v2921_v3  ;;  %v3010_v3 = vld [vmem:[%s3481_s2] sm:$0xff]  }
  0xb8   : > { %2717 = vmatmul.mubr.msk.bf16.vlgmr.msra.gmra.mrb[12].mxu1 %vm1562_vm3, %v3359_v33 }
  0xb9   : > { %2675 = vmatpush3.bf16.msra.mxu1 %v3010_v3 }
  0xba   : > { %1634 = vmatpush1.bf16.msra.mxu0 %v2919_v9  ;;  %v3015_v9 = vld [vmem:[%s3481_s2 + $0x58] sm:$0xff]  }
  0xbb   : > { %1635 = vmatprep.subr.bf16.mxu0 %v2926_v12  ;;  %v3017_v12 = vld [vmem:[%s3481_s2 + $0x60] sm:$0xff]  }
  0xbe   : > { %1636 = vmatpush1.bf16.msra.mxu0 %v2924_v17 }
  0xbf   : > { %1637 = vmatprep.subr.bf16.mxu0 %v2931_v19 }
  0xc2   : > { %1638 = vmatpush1.bf16.msra.mxu0 %v2929_v22 }
  0xc3   : > { %1639 = vmatprep.subr.bf16.mxu0 %v2936_v23  ;;  %v3021_v23 = vld [vmem:[%s3481_s2 + $0x70] sm:$0xff]  }
  0xc6   : > { %1640 = vmatpush1.bf16.msra.mxu0 %v2934_v27  ;;  %v3024_v27 = vld [vmem:[%s3481_s2 + $0x38] sm:$0xff]  }
  0xc7   : > { %1652 = vmatprep.subr.bf16.mxu0 %v2941_v30 }
  0xc9   : > { %1642 = vmatmul.mubr.bf16.vlgmr.msra.gmra.mrb[0].mxu0 %v3320_v43  ;;  %v2969_v43 = vld [vmem:[#allocation7 + $0x390] ss:$12 sps:$4 sm:$0xff]  }
  0xca   : > { %1653 = vmatpush1.bf16.msra.mxu0 %v2939_v31  ;;  %1684 = vmatprep.mubr.bf16.mxu0 %v563_v4  ;;  %v3011_v4 = vld [vmem:[%s3481_s2 + $0x48] sm:$0xff]  }
  0xcb   : > { %1654 = vmatprep.subr.bf16.mxu0 %v2946_v32  ;;  %2676 = vmatprep.subr.bf16.mxu1 %v3011_v4 }
  0xcc   : > { %2677 = vmatpush3.bf16.msra.mxu1 %v3012_v5 }
  0xcd   : > { %2678 = vmatprep.subr.bf16.mxu1 %v3013_v6 }
  0xce   : > { %1655 = vmatpush1.bf16.msra.mxu0 %v2944_v16 }
  0xcf   : > { %1656 = vmatprep.subr.bf16.mxu0 %v2951_v34 }
  0xd0   : > { %2679 = vmatpush3.bf16.msra.mxu1 %v3014_v7 }
  0xd1   : > { %2680 = vmatprep.subr.bf16.mxu1 %v3015_v9 }
  0xd2   : > { %1657 = vmatpush1.bf16.msra.mxu0 %v2949_v35 }
  0xd3   : > { %1658 = vmatprep.subr.bf16.mxu0 %v2956_v36 }
  0xd4   : > { %2681 = vmatpush3.bf16.msra.mxu1 %v3016_v10 }
  0xd5   : > { %2682 = vmatprep.subr.bf16.mxu1 %v3017_v12 }
  0xd6   : > { %1659 = vmatpush1.bf16.msra.mxu0 %v2954_v37 }
  0xd7   : > { %1660 = vmatprep.subr.bf16.mxu0 %v2961_v38 }
  0xd8   : > { %2683 = vmatpush3.bf16.msra.mxu1 %v3018_v8  ;;  %v3026_v8 = vld [vmem:[%s3481_s2 + $0x88] sm:$0xff]  }
  0xd9   : > { %2684 = vmatprep.subr.bf16.mxu1 %v3019_v13  ;;  %v3027_v13 = vld [vmem:[%s3481_s2 + $0x90] sm:$0xff]  }
  0xda   : > { %1661 = vmatpush1.bf16.msra.mxu0 %v2959_v39 }
  0xdb   : > { %1662 = vmatprep.subr.bf16.mxu0 %v2966_v40 }
  0xdc   : > { %2685 = vmatpush3.bf16.msra.mxu1 %v3020_v14  ;;  %v3028_v14 = vld [vmem:[%s3481_s2 + $0x98] sm:$0xff]  }
  0xdd   : > { %2686 = vmatprep.subr.bf16.mxu1 %v3021_v23  ;;  %v3035_v23 = vld [vmem:[#allocation9 + $0x10] sm:$0xff]  }
  0xde   : > { %1663 = vmatpush1.bf16.msra.mxu0 %v2964_v41 }
  0xdf   : > { %1664 = vmatprep.subr.bf16.mxu0 %v2971_v42 }
  0xe0   : > { %2687 = vmatpush3.bf16.msra.mxu1 %v3022_v24  ;;  %v3036_v24 = vld [vmem:[#allocation9 + $0x18] sm:$0xff]  }
  0xe1   : > { %2688 = vmatprep.subr.bf16.mxu1 %v3023_v25  ;;  %v3037_v25 = vld [vmem:[#allocation9 + $0x20] sm:$0xff]  }
  0xe2   : > { %1665 = vmatpush1.bf16.msra.mxu0 %v2969_v43 }
  0xe3   : > { %1666 = vmatprep.subr.bf16.mxu0 %v2976_v44 }
  0xe4   : > { %2689 = vmatpush3.bf16.msra.mxu1 %v3024_v27  ;;  %v3039_v27 = vld [vmem:[#allocation9 + $0x30] sm:$0xff]  }
  0xe5   : > { %2720 = vmatprep.subr.bf16.mxu1 %v3119_v28 }
  0xe6   : > { %1667 = vmatpush1.bf16.msra.mxu0 %v2974_v45 }
  0xe7   : > { %1668 = vmatprep.subr.bf16.mxu0 %v2981_v46 }
  0xea   : > { %1669 = vmatpush1.bf16.msra.mxu0 %v2979_v47 }
  0xeb   : > { %1670 = vmatprep.subr.bf16.mxu0 %v2986_v48 }
  0xee   : > { %1671 = vmatpush1.bf16.msra.mxu0 %v2984_v49 }
  0xef   : > { %1672 = vmatprep.subr.bf16.mxu0 %v2989_v50 }
  0xf2   : > { %1673 = vmatpush1.bf16.msra.mxu0 %v2987_v51 }
  0xf3   : > { %1674 = vmatprep.subr.bf16.mxu0 %v2993_v52 }
  0xf6   : > { %1675 = vmatpush1.bf16.msra.mxu0 %v2991_v53 }
  0xf7   : > { %1676 = vmatprep.subr.bf16.mxu0 %v2996_v54 }
  0xfa   : > { %1677 = vmatpush1.bf16.msra.mxu0 %v2994_v55 }
  0xfb   : > { %1678 = vmatprep.subr.bf16.mxu0 %v2999_v56  ;;  %v765_v56 = vsub.s32 0, %v3266_v11 }
  0xfe   : > { %1679 = vmatpush1.bf16.msra.mxu0 %v2997_v57  ;;  %v769_v57 = vsub.s32 1, %v3266_v11 }
  0xff   : > { %1680 = vmatprep.subr.bf16.mxu0 %v3002_v58  ;;  %v766_v58 = vrot.slane %v761_v29, %v765_v56 }
 0x102   : > { %1681 = vmatpush1.bf16.msra.mxu0 %v3000_v59  ;;  %v770_v59 = vrot.slane %v761_v29, %v769_v57 }
 0x103   : > { %1682 = vmatprep.subr.bf16.mxu0 %v3005_v60 }
 0x106   : > { %1683 = vmatpush1.bf16.msra.mxu0 %v3003_v61 }
 0x107   : > { %1695 = vmatprep.subr.bf16.mxu0 %v3008_v62 }
 0x109   : > { %1685 = vmatmul.mubr.bf16.vlgmr.msra.gmra.mrb[0].mxu0 %v3347_v26  ;;  %v773_v26 = vsub.s32 2, %v3266_v11  ;;  %v3025_v11 = vld [vmem:[%s3481_s2 + $0x80] sm:$0xff]  }
 0x10a   : > { %1696 = vmatpush1.bf16.msra.mxu0 %v3006_v63  ;;  %1727 = vmatprep.mubr.bf16.mxu0 %v3121_v1 }
 0x10b   : > { %v774_v30 = vrot.slane %v761_v29, %v773_v26  ;;  %v3038_v26 = vld [vmem:[#allocation9 + $0x28] sm:$0xff]   ;;  %v3040_v29 = vld [vmem:[#allocation9 + $0x38] sm:$0xff]  }
 0x115   : > { %2561 = vmatmul.mubr.msk.bf16.vlgmr.msra.gmra.mrb[0].mxu0 %vm1562_vm3, %v3359_v33 }
 0x143   : > { %v2622_v17 = vpop.f32.mrb[0].mxu1 }
 0x144   : > { %v2623_v18 = vpop.f32.mrb[1].mxu1 }
 0x145   : > { %v2624_v19 = vadd.f32 %v2623_v18, %v2622_v17  ;;  %v2625_v20 = vpop.f32.mrb[2].mxu1  ;;  %v3029_v17 = vld [vmem:[%s3481_s2 + $0xa0] sm:$0xff]   ;;  %v3030_v18 = vld [vmem:[%s3481_s2 + $0xa8] sm:$0xff]  }
 0x146   : > { %v2626_v21 = vpop.f32.mrb[3].mxu1 }
 0x147   : > { %v2627_v22 = vadd.f32 %v2626_v21, %v2625_v20  ;;  %v1773_v15 = vadd.f32 %v2624_v19, %v774_v30  ;;  %v3031_v19 = vld [vmem:[%s3481_s2 + $0xb0] sm:$0xff]   ;;  %v3032_v20 = vld [vmem:[%s3481_s2 + $0xb8] sm:$0xff]  }
 0x148   : > { %v3033_v21 = vld [vmem:[#allocation9] sm:$0xff]  }
 0x149   : > { %v1776_v33 = vadd.f32 %v2627_v22, %v774_v30  ;;  %v3034_v22 = vld [vmem:[#allocation9 + $0x8] sm:$0xff]  }
 0x163   : > { %v2644_v31 = vpop.f32.mrb[4].mxu1 }
 0x164   : > { %v2645_v32 = vpop.f32.mrb[5].mxu1 }
 0x165   : > { %v2646_v16 = vadd.f32 %v2645_v32, %v2644_v31  ;;  %v2647_v34 = vpop.f32.mrb[6].mxu1 }
 0x166   : > { %v2648_v35 = vpop.f32.mrb[7].mxu1 }
 0x167   : > { %v1814_v36 = vadd.f32 %v2646_v16, %v1773_v15  ;;  %v2649_v37 = vadd.f32 %v2648_v35, %v2647_v34  ;;  %v2563_v34 = vld [vmem:[%s3482_s3] ss:$0 sm:$0xff] }
 0x169   : > { %v1817_v38 = vadd.f32 %v2649_v37, %v1776_v33 }
 0x183   : > { %v2666_v39 = vpop.f32.mrb[8].mxu1 }
 0x184   : > { %v2667_v40 = vpop.f32.mrb[9].mxu1 }
 0x185   : > { %v2668_v41 = vadd.f32 %v2667_v40, %v2666_v39  ;;  %v2669_v42 = vpop.f32.mrb[10].mxu1 }
 0x186   : > { %v2670_v43 = vpop.f32.mrb[11].mxu1 }
 0x187   : > { %v2671_v44 = vadd.f32 %v2670_v43, %v2669_v42  ;;  %v1855_v45 = vadd.f32 %v2668_v41, %v1814_v36 }
 0x189   : > { %v1858_v46 = vadd.f32 %v2671_v44, %v1817_v38 }
 0x18b   : > { %v1895_v47 = vpop.f32.mrb[12].mxu1 }
 0x18c   : > { %v1896_v48 = vadd.f32 %v1895_v47, %v1855_v45  ;;  %v2718_v49 = vpop.f32.mrb[13].mxu1  ;;  %v2588_v45 = vld [vmem:[%s3484_s5] ss:$0 sm:$0xff] }
 0x18d   : > { %v1898_v50 = vpop.f32.mrb[14].mxu1 }
 0x18e   : > { %v1904_v51 = vmax.f32 %v1896_v48, 0.0  ;;  %v1899_v52 = vadd.f32 %v1898_v50, %v1858_v46  ;;  %v2719_v53 = vpop.f32.mrb[15].mxu1 }
 0x190   : > { %v1907_v54 = vmax.f32 %v1899_v52, 0.0 }
 0x192   : > { %v1910_v55 = vpack.c.bf16 %v1907_v54, %v1904_v51 }
 0x1e8   : > { %v1729_v60 = vpop.f32.mrb[0].mxu0 }
 0x1e9   : > { %v2760_v61 = vadd.f32 %v1729_v60, %v766_v58  ;;  %v1731_v62 = vpop.f32.mrb[1].mxu0 }
 0x1ea   : > { %v2761_v63 = vadd.f32 %v1731_v62, %v770_v59  ;;  %v1733_v1 = vpop.f32.mrb[2].mxu0 }
 0x1eb   : > { %v2762_v2 = vadd.f32 %v1733_v1, %v766_v58  ;;  %v1735_v3 = vpop.f32.mrb[3].mxu0  ;;  %v1902_v5 = vmax.f32 %v2760_v61, 0.0 }
 0x1ec   : > { %v2763_v4 = vadd.f32 %v1735_v3, %v770_v59  ;;  %v1903_v7 = vmax.f32 %v2761_v63, 0.0 }
 0x1ed   : > { %v1905_v6 = vmax.f32 %v2762_v2, 0.0 }
 0x1ee   : > { %v1906_v9 = vmax.f32 %v2763_v4, 0.0 }
 0x1ef   : > { %v1908_v10 = vpack.c.bf16 %v1905_v6, %v1902_v5 }
 0x1f0   : > { %v1909_v12 = vpack.c.bf16 %v1906_v9, %v1903_v7 }
 0x1f2   : > { %2142 = vmatprep.mubr.bf16.mxu1 %v1909_v12 }
 0x1f3   : > { %2143 = vmatmul.mubr.bf16.vlgmr.msra.gmra.mrb[16].mxu1 %v1908_v10 }
 0x1f4   : > { %2721 = vmatpush3.bf16.msra.mxu1 %v3025_v11  ;;  %2736 = vmatprep.mubr.msk.bf16.mxu1 %vm3120_vm4, %v3119_v28 }
 0x1f5   : > { %2722 = vmatprep.subr.bf16.mxu1 %v3119_v28 }
 0x1f8   : > { %2723 = vmatpush3.bf16.msra.mxu1 %v3026_v8 }
 0x1f9   : > { %2724 = vmatprep.subr.bf16.mxu1 %v3119_v28 }
 0x1fc   : > { %2725 = vmatpush3.bf16.msra.mxu1 %v3027_v13 }
 0x1fd   : > { %2726 = vmatprep.subr.bf16.mxu1 %v3119_v28 }
 0x200   : > { %2727 = vmatpush3.bf16.msra.mxu1 %v3028_v14 }
 0x201   : > { %2728 = vmatprep.subr.bf16.mxu1 %v3119_v28 }
 0x204   : > { %2729 = vmatpush3.bf16.msra.mxu1 %v3029_v17 }
 0x205   : > { %2730 = vmatprep.subr.bf16.mxu1 %v3119_v28 }
 0x208   : > { %2731 = vmatpush3.bf16.msra.mxu1 %v3030_v18 }
 0x209   : > { %2732 = vmatprep.subr.bf16.mxu1 %v3119_v28 }
 0x20c   : > { %2733 = vmatpush3.bf16.msra.mxu1 %v3031_v19 }
 0x20d   : > { %2734 = vmatprep.subr.bf16.mxu1 %v3119_v28 }
 0x210   : > { %2735 = vmatpush3.bf16.msra.mxu1 %v3032_v20 }
 0x211   : > { %2740 = vmatprep.subr.bf16.mxu1 %v3119_v28 }
 0x213   : > { %2737 = vmatmul.mubr.bf16.vlgmr.msra.gmra.mrb[20].mxu1 %v1910_v55 }
 0x214   : > { %2756 = vmatprep.mubr.msk.bf16.mxu1 %vm3120_vm4, %v3119_v28  ;;  %2741 = vmatpush3.bf16.msra.mxu1 %v3033_v21 }
 0x215   : > { %2742 = vmatprep.subr.bf16.mxu1 %v3119_v28 }
 0x218   : > { %2743 = vmatpush3.bf16.msra.mxu1 %v3034_v22 }
 0x219   : > { %2744 = vmatprep.subr.bf16.mxu1 %v3119_v28 }
 0x21c   : > { %2745 = vmatpush3.bf16.msra.mxu1 %v3035_v23 }
 0x21d   : > { %2746 = vmatprep.subr.bf16.mxu1 %v3119_v28 }
 0x220   : > { %2747 = vmatpush3.bf16.msra.mxu1 %v3036_v24 }
 0x221   : > { %2748 = vmatprep.subr.bf16.mxu1 %v3119_v28 }
 0x224   : > { %2749 = vmatpush3.bf16.msra.mxu1 %v3037_v25 }
 0x225   : > { %2750 = vmatprep.subr.bf16.mxu1 %v3119_v28 }
 0x228   : > { %2751 = vmatpush3.bf16.msra.mxu1 %v3038_v26 }
 0x229   : > { %2752 = vmatprep.subr.bf16.mxu1 %v3119_v28 }
 0x22c   : > { %2753 = vmatpush3.bf16.msra.mxu1 %v3039_v27 }
 0x22d   : > { %2754 = vmatprep.subr.bf16.mxu1 %v3119_v28 }
 0x230   : > { %2755 = vmatpush3.bf16.msra.mxu1 %v3040_v29 }
 0x2c6   : > { %v2690_v30 = vpop.f32.mrb[16].mxu1 }
 0x2c7   : > { %v2691_v15 = vpop.f32.mrb[17].mxu1 }
 0x2c8   : > { %v2692_v31 = vadd.f32 %v2691_v15, %v2690_v30  ;;  %v2693_v32 = vpop.f32.mrb[18].mxu1 }
 0x2c9   : > { %v2694_v33 = vpop.f32.mrb[19].mxu1 }
 0x2ca   : > { %v2695_v16 = vadd.f32 %v2694_v33, %v2693_v32  ;;  %v2145_v35 = vadd.f32 %v2692_v31, %v2563_v34 }
 0x2cc   : > { %v2148_v39 = vadd.f32 %v2695_v16, %v2563_v34 }
 0x2e6   : > { %v2185_v36 = vpop.f32.mrb[20].mxu1 }
 0x2e7   : > { %v2186_v37 = vadd.f32 %v2185_v36, %v2145_v35  ;;  %v2738_v38 = vpop.f32.mrb[21].mxu1 }
 0x2e8   : > { %v2188_v28 = vpop.f32.mrb[22].mxu1 }
 0x2e9   : > { %v2189_v40 = vadd.f32 %v2188_v28, %v2148_v39  ;;  %v2739_v41 = vpop.f32.mrb[23].mxu1  ;;  %v2192_v42 = vmax.f32 %v2186_v37, 0.0 }
 0x2eb   : > { %v2193_v43 = vmax.f32 %v2189_v40, 0.0 }
 0x2ed   : > { %v2194_v44 = vpack.c.bf16 %v2193_v43, %v2192_v42 }
 0x2ef   : > { %2757 = vmatmul.mubr.bf16.vlgmr.msra.gmra.mrb[24].mxu1 %v2194_v44 }
 0x3c2   : > { %v2300_v46 = vpop.f32.mrb[24].mxu1 }
 0x3c3   : > { %v2301_v47 = vadd.f32 %v2588_v45, %v2300_v46  ;;  %v2758_v48 = vpop.f32.mrb[25].mxu1 }
 0x3c4   : > { %v2303_v49 = vpop.f32.mrb[26].mxu1 }
 0x3c5   : > { %2307 = vst [vmem:[%s340_s22] sm:$0xff] %v2301_v47  ;;  %v2304_v50 = vadd.f32 %v2588_v45, %v2303_v49  ;;  %v2759_v51 = vpop.f32.mrb[27].mxu1 }
 0x3c7   : > { %2308 = vst [vmem:[%s340_s22 + $0x8] sm:$0xff] %v2304_v50 }
 0x3c8 PF: > { %s21_s29 = sadd.s32 1, %s3111_s29  }
 0x3c9   : > { %p18_p11 = scmp.ge.s32.totalorder %s21_s29, 4  }
 0x3cb   :  { %20 = sbr.rel (!%p18_p11) target bundleno = 4 (0x4), region = 106 }
 0x3d2   :  { %2331 = vsyncpa [#allocation8], 1 }
 0x3d3   :  { %2333 = vsyncpa [#allocation8 + $0x1], 1 }
 0x3d4   :  { %2334 = vsyncpa [#allocation10], 1 }

</bundles_post_ra>
